<compile_context>
chip_gen: v7x
topology: tpu7x:2x2x1
jax: 0.10.0
libtpu: 0.0.40
codegen_flags: <defaults>
</compile_context>

<pallas_src>
import numpy as np
import jax
import jax.numpy as jnp
from jax.experimental import pallas as pl
from jax.experimental.pallas import tpu as pltpu


# ----------------------------- parameter setup ------------------------------

def _l2_normalize(v, eps=1e-12):
    return v / (jnp.linalg.norm(v) + eps)


def spectral_norm_weight(weight, u_key):
    """One power-iteration spectral normalization (mirrors torch spectral_norm
    forward behaviour in training mode, with a deterministic initial u).
    Parameter-side preprocessing, done in plain JAX (outside the kernel)."""
    c_out = weight.shape[0]
    w_mat = weight.reshape(c_out, -1)
    u = _l2_normalize(jax.random.normal(u_key, (c_out,), dtype=weight.dtype))
    v = _l2_normalize(w_mat.T @ u)
    u = _l2_normalize(w_mat @ v)
    sigma = u @ (w_mat @ v)
    return weight / sigma


def _round_up(v, m):
    return (v + m - 1) // m * m


# --------------------------------- wrapper ----------------------------------

def block_forward(x, weight, stride):
    """x: (N, C_in, H, W); weight: (C_out, C_in, KH, KW).  Bias is omitted on
    purpose: InstanceNorm (affine=False) cancels any per-channel constant."""
    N, C_in, H, W = x.shape
    C_out, _, KH, KW = weight.shape
    s = int(stride)
    pad = 1
    eps = 1e-5
    slope = 0.2

    # Reflect pad (input-sized, cheap) -- matches padding_mode='reflect'.
    xp = jnp.pad(x, ((0, 0), (0, 0), (pad, pad), (pad, pad)), mode="reflect")
    Hp, Wp = xp.shape[2], xp.shape[3]
    Ho = (Hp - KH) // s + 1
    Wo = (Wp - KW) // s + 1

    # Round padded H/W up to multiples of the stride (zero fill; those rows /
    # cols are never read by valid output positions and junk is masked below).
    Hs = -(-Hp // s)
    Ws = -(-Wp // s)
    xp = jnp.pad(xp, ((0, 0), (0, 0), (0, Hs * s - Hp), (0, Ws * s - Wp)))

    # Stride-phase decomposition: xp[n, c, hs*s+rh, ws*s+rw] -> channel
    # (rh*s+rw)*C_in + c at spatial (hs, ws).  Flatten spatial, pad the flat
    # axis so every tap window [off, off+L) is in-bounds and lane aligned.
    xph = xp.reshape(N, C_in, Hs, s, Ws, s).transpose(0, 3, 5, 1, 2, 4)
    CS = s * s * C_in
    xph = xph.reshape(N, CS, Hs * Ws)

    Qh = -(-KH // s)
    Qw = -(-KW // s)
    Q = Qh * Qw
    L = _round_up(Ho * Ws, 128)                      # lane-dense acc/out width
    off_max = (Qh - 1) * Ws + (Qw - 1)
    Lin = _round_up(max(Hs * Ws, off_max + L), 128)
    xph = jnp.pad(xph, ((0, 0), (0, 0), (0, Lin - Hs * Ws))).astype(jnp.bfloat16)

    # Group the conv weight by tap-quotient (qh, qw); each group contracts over
    # the s*s*C_in phase channels: w_g[q, co, (rh*s+rw)*C_in + c]
    #   = weight[co, c, qh*s+rh, qw*s+rw]   (zero-filled past KH/KW).
    wz = jnp.pad(weight, ((0, 0), (0, 0), (0, Qh * s - KH), (0, Qw * s - KW)))
    w_g = wz.reshape(C_out, C_in, Qh, s, Qw, s)
    w_g = w_g.transpose(2, 4, 0, 3, 5, 1).reshape(Q, C_out, CS)
    w_g = w_g.astype(jnp.bfloat16)

    offsets = tuple(qh * Ws + qw for qh in range(Qh) for qw in range(Qw))

    # Validity mask over the flat spatial axis (row pitch Ws > Wo plus tail
    # padding) -> exact instance-norm statistics via MXU matmuls.
    m = np.zeros((L, 1), np.float32)
    idx = np.arange(L)
    m[(idx < Ho * Ws) & (idx % Ws < Wo), 0] = 1.0
    mask = jnp.asarray(m)
    inv_count = 1.0 / float(Ho * Wo)

    # --------------------------- Pallas kernel ------------------------------
    def kernel(xp_ref, w_ref, mask_ref, o_ref):
        # xp_ref : (1, CS, Lin)  bf16  phase-split flattened input (one sample)
        # w_ref  : (Q, C_out, CS) bf16 tap-grouped conv weight
        # mask_ref: (L, 1) f32 validity mask
        # o_ref  : (1, C_out, L) output (lane axis = flattened spatial)
        x_s = xp_ref[0]                                        # (CS, Lin)
        acc = jnp.zeros((C_out, L), jnp.float32)
        for q in range(Q):                                     # static unroll
            xs = x_s[:, offsets[q]:offsets[q] + L]             # (CS, L)
            acc = acc + jnp.dot(w_ref[q], xs,
                                preferred_element_type=jnp.float32)

        # One-pass masked instance-norm stats on the MXU.
        msk = mask_ref[...]                                    # (L, 1)
        row_sum = jnp.dot(acc, msk, preferred_element_type=jnp.float32)
        row_sumsq = jnp.dot(acc * acc, msk, preferred_element_type=jnp.float32)
        mean = row_sum * inv_count                             # (C_out, 1)
        var = row_sumsq * inv_count - mean * mean
        yn = (acc - mean) * jax.lax.rsqrt(var + eps)

        # LeakyReLU(0.2)
        o_ref[0] = jnp.where(yn >= 0.0, yn, slope * yn).astype(o_ref.dtype)

    out = pl.pallas_call(
        kernel,
        out_shape=jax.ShapeDtypeStruct((N, C_out, L), x.dtype),
        grid=(N,),
        in_specs=[
            pl.BlockSpec((1, CS, Lin), lambda n: (n, 0, 0)),
            pl.BlockSpec((Q, C_out, CS), lambda n: (0, 0, 0)),
            pl.BlockSpec((L, 1), lambda n: (0, 0)),
        ],
        out_specs=pl.BlockSpec((1, C_out, L), lambda n: (n, 0, 0)),
        compiler_params=pltpu.CompilerParams(
            dimension_semantics=("parallel",)),
    )(xph, w_g, mask)

    # (N, C_out, L) -> NCHW: cheap slice + reshape (no transpose pass).
    out = out[:, :, :Ho * Ws].reshape(N, C_out, Ho, Ws)[:, :, :, :Wo]
    return out


# ------------------------------ pure-JAX reference ---------------------------

def block_reference(x, weight, bias, stride):
    xp = jnp.pad(x, ((0, 0), (0, 0), (1, 1), (1, 1)), mode="reflect")
    y = jax.lax.conv_general_dilated(
        xp, weight, (stride, stride), "VALID",
        dimension_numbers=("NCHW", "OIHW", "NCHW"))
    y = y + bias.reshape(1, -1, 1, 1)
    mean = y.mean(axis=(2, 3), keepdims=True)
    var = ((y - mean) ** 2).mean(axis=(2, 3), keepdims=True)
    yn = (y - mean) / jnp.sqrt(var + 1e-5)
    return jnp.where(yn >= 0, yn, 0.2 * yn)


# ----------------------------------- main ------------------------------------

if __name__ == "__main__":
    # Block(in_channels=4, out_channels=8, stride=2), x: (2, 4, 16, 16)
    N, C_in, H, W = 2, 4, 16, 16
    C_out, KH, KW, stride = 8, 4, 4, 2

    key = jax.random.PRNGKey(0)
    k_x, k_w, k_b, k_u = jax.random.split(key, 4)

    x = jax.random.normal(k_x, (N, C_in, H, W), dtype=jnp.float32)

    # deterministic synthetic parameters (kaiming-ish scale)
    fan_in = C_in * KH * KW
    w_raw = jax.random.normal(k_w, (C_out, C_in, KH, KW), dtype=jnp.float32)
    w_raw = w_raw * (1.0 / np.sqrt(fan_in))
    bias = jax.random.normal(k_b, (C_out,), dtype=jnp.float32) * 0.1

    # spectral normalization of the conv weight (parameter setup, plain JAX)
    weight = spectral_norm_weight(w_raw, k_u)

    # Kernel: bias intentionally not passed (InstanceNorm cancels it exactly).
    out = jax.block_until_ready(block_forward(x, weight, stride))

    # Reference keeps the bias + f32 conv, demonstrating the cancellation.
    ref = jax.block_until_ready(block_reference(x, weight, bias, stride))

    # Tolerance sized for bf16 matmul inputs (f32 accumulation).
    np.testing.assert_allclose(np.asarray(out), np.asarray(ref),
                               rtol=2e-2, atol=2e-2)
    assert out.shape == (N, C_out, H // stride, W // stride)

    print("KERNEL_OK")
</pallas_src>

<mosaic_0001>
module attributes {stable_mosaic.version = 11 : i64} {
  func.func @kernel(%arg0: i32, %arg1: memref<1x16x256xbf16, #tpu.memory_space<vmem>>, %arg2: memref<4x8x16xbf16, #tpu.memory_space<vmem>>, %arg3: memref<128x1xf32, #tpu.memory_space<vmem>>, %arg4: memref<1x8x128xf32, #tpu.memory_space<vmem>>) attributes {dimension_semantics = [#tpu.dimension_semantics<parallel>], iteration_bounds = array<i64: 2>, scalar_prefetch = 0 : i64, scratch_operands = 0 : i64, tpu.core_type = #tpu.core_type<tc>, window_params = [{transform_indices = @transform_0, window_bounds = array<i64: 1, 16, 256>}, {pipeline_mode = #tpu.pipeline_mode<synchronous>, transform_indices = @transform_1, window_bounds = array<i64: 4, 8, 16>}, {pipeline_mode = #tpu.pipeline_mode<synchronous>, transform_indices = @transform_2, window_bounds = array<i64: 128, 1>}, {transform_indices = @transform_3, window_bounds = array<i64: 1, 8, 128>}]} {
    %c0 = arith.constant 0 : index
    %c0_0 = arith.constant 0 : index
    %c0_1 = arith.constant 0 : index
    %0 = vector.load %arg1[%c0, %c0_0, %c0_1] : memref<1x16x256xbf16, #tpu.memory_space<vmem>>, vector<1x16x256xbf16>
    %1 = vector.shape_cast %0 : vector<1x16x256xbf16> to vector<16x256xbf16>
    %cst = arith.constant 0.000000e+00 : f32
    %2 = vector.broadcast %cst : f32 to vector<8x128xf32>
    %3 = vector.extract_strided_slice %1 {offsets = [0, 0], sizes = [16, 128], strides = [1, 1]} : vector<16x256xbf16> to vector<16x128xbf16>
    %c0_2 = arith.constant 0 : index
    %c0_3 = arith.constant 0 : index
    %c0_4 = arith.constant 0 : index
    %4 = vector.load %arg2[%c0_2, %c0_3, %c0_4] : memref<4x8x16xbf16, #tpu.memory_space<vmem>>, vector<1x8x16xbf16>
    %5 = vector.shape_cast %4 : vector<1x8x16xbf16> to vector<8x16xbf16>
    %cst_5 = arith.constant dense<0.000000e+00> : vector<8x128xf32>
    %6 = tpu.matmul %5, %3, %cst_5 {dimension_numbers = #tpu.dot_dimension_numbers<[1], [0], [0], [1], [0, 0, 1, 1], [], []>} : vector<8x16xbf16>, vector<16x128xbf16>, vector<8x128xf32> -> vector<8x128xf32>
    %7 = arith.addf %2, %6 : vector<8x128xf32>
    %8 = vector.extract_strided_slice %1 {offsets = [0, 1], sizes = [16, 128], strides = [1, 1]} : vector<16x256xbf16> to vector<16x128xbf16>
    %c1 = arith.constant 1 : index
    %c0_6 = arith.constant 0 : index
    %c0_7 = arith.constant 0 : index
    %9 = vector.load %arg2[%c1, %c0_6, %c0_7] : memref<4x8x16xbf16, #tpu.memory_space<vmem>>, vector<1x8x16xbf16>
    %10 = vector.shape_cast %9 : vector<1x8x16xbf16> to vector<8x16xbf16>
    %cst_8 = arith.constant dense<0.000000e+00> : vector<8x128xf32>
    %11 = tpu.matmul %10, %8, %cst_8 {dimension_numbers = #tpu.dot_dimension_numbers<[1], [0], [0], [1], [0, 0, 1, 1], [], []>} : vector<8x16xbf16>, vector<16x128xbf16>, vector<8x128xf32> -> vector<8x128xf32>
    %12 = arith.addf %7, %11 : vector<8x128xf32>
    %13 = vector.extract_strided_slice %1 {offsets = [0, 9], sizes = [16, 128], strides = [1, 1]} : vector<16x256xbf16> to vector<16x128xbf16>
    %c2 = arith.constant 2 : index
    %c0_9 = arith.constant 0 : index
    %c0_10 = arith.constant 0 : index
    %14 = vector.load %arg2[%c2, %c0_9, %c0_10] : memref<4x8x16xbf16, #tpu.memory_space<vmem>>, vector<1x8x16xbf16>
    %15 = vector.shape_cast %14 : vector<1x8x16xbf16> to vector<8x16xbf16>
    %cst_11 = arith.constant dense<0.000000e+00> : vector<8x128xf32>
    %16 = tpu.matmul %15, %13, %cst_11 {dimension_numbers = #tpu.dot_dimension_numbers<[1], [0], [0], [1], [0, 0, 1, 1], [], []>} : vector<8x16xbf16>, vector<16x128xbf16>, vector<8x128xf32> -> vector<8x128xf32>
    %17 = arith.addf %12, %16 : vector<8x128xf32>
    %18 = vector.extract_strided_slice %1 {offsets = [0, 10], sizes = [16, 128], strides = [1, 1]} : vector<16x256xbf16> to vector<16x128xbf16>
    %c3 = arith.constant 3 : index
    %c0_12 = arith.constant 0 : index
    %c0_13 = arith.constant 0 : index
    %19 = vector.load %arg2[%c3, %c0_12, %c0_13] : memref<4x8x16xbf16, #tpu.memory_space<vmem>>, vector<1x8x16xbf16>
    %20 = vector.shape_cast %19 : vector<1x8x16xbf16> to vector<8x16xbf16>
    %cst_14 = arith.constant dense<0.000000e+00> : vector<8x128xf32>
    %21 = tpu.matmul %20, %18, %cst_14 {dimension_numbers = #tpu.dot_dimension_numbers<[1], [0], [0], [1], [0, 0, 1, 1], [], []>} : vector<8x16xbf16>, vector<16x128xbf16>, vector<8x128xf32> -> vector<8x128xf32>
    %22 = arith.addf %17, %21 : vector<8x128xf32>
    %c0_15 = arith.constant 0 : index
    %c0_16 = arith.constant 0 : index
    %23 = vector.load %arg3[%c0_15, %c0_16] : memref<128x1xf32, #tpu.memory_space<vmem>>, vector<128x1xf32>
    %cst_17 = arith.constant dense<0.000000e+00> : vector<8x1xf32>
    %24 = tpu.matmul %22, %23, %cst_17 {dimension_numbers = #tpu.dot_dimension_numbers<[1], [0], [0], [1], [0, 0, 1, 1], [], []>} : vector<8x128xf32>, vector<128x1xf32>, vector<8x1xf32> -> vector<8x1xf32>
    %25 = arith.mulf %22, %22 : vector<8x128xf32>
    %cst_18 = arith.constant dense<0.000000e+00> : vector<8x1xf32>
    %26 = tpu.matmul %25, %23, %cst_18 {dimension_numbers = #tpu.dot_dimension_numbers<[1], [0], [0], [1], [0, 0, 1, 1], [], []>} : vector<8x128xf32>, vector<128x1xf32>, vector<8x1xf32> -> vector<8x1xf32>
    %cst_19 = arith.constant 1.562500e-02 : f32
    %27 = vector.broadcast %cst_19 : f32 to vector<8x1xf32>
    %28 = arith.mulf %24, %27 : vector<8x1xf32>
    %cst_20 = arith.constant 1.562500e-02 : f32
    %29 = vector.broadcast %cst_20 : f32 to vector<8x1xf32>
    %30 = arith.mulf %26, %29 : vector<8x1xf32>
    %31 = arith.mulf %28, %28 : vector<8x1xf32>
    %32 = arith.subf %30, %31 : vector<8x1xf32>
    %33 = vector.broadcast %28 : vector<8x1xf32> to vector<8x128xf32>
    %34 = arith.subf %22, %33 : vector<8x128xf32>
    %cst_21 = arith.constant 9.99999974E-6 : f32
    %35 = vector.broadcast %cst_21 : f32 to vector<8x1xf32>
    %36 = arith.addf %32, %35 : vector<8x1xf32>
    %37 = math.rsqrt %36 : vector<8x1xf32>
    %38 = vector.broadcast %37 : vector<8x1xf32> to vector<8x128xf32>
    %39 = arith.mulf %34, %38 : vector<8x128xf32>
    %cst_22 = arith.constant 0.000000e+00 : f32
    %40 = vector.broadcast %cst_22 : f32 to vector<8x128xf32>
    %41 = arith.cmpf oge, %39, %40 : vector<8x128xf32>
    %cst_23 = arith.constant 2.000000e-01 : f32
    %42 = vector.broadcast %cst_23 : f32 to vector<8x128xf32>
    %43 = arith.mulf %42, %39 : vector<8x128xf32>
    %44 = arith.select %41, %39, %43 : vector<8x128xi1>, vector<8x128xf32>
    %c0_24 = arith.constant 0 : index
    %c0_25 = arith.constant 0 : index
    %c0_26 = arith.constant 0 : index
    %45 = vector.load %arg4[%c0_24, %c0_25, %c0_26] : memref<1x8x128xf32, #tpu.memory_space<vmem>>, vector<1x8x128xf32>
    %46 = vector.shape_cast %45 : vector<1x8x128xf32> to vector<8x128xf32>
    %47 = vector.shape_cast %44 : vector<8x128xf32> to vector<1x8x128xf32>
    tpu.vector_store %arg4[%c0_24, %c0_25, %c0_26], %47 {strides = array<i32>} : memref<1x8x128xf32, #tpu.memory_space<vmem>>, vector<1x8x128xf32>,
    return
  }
  func.func @transform_0(%arg0: i32) -> (i32, i32, i32) {
    %c0_i32 = arith.constant 0 : i32
    %c0_i32_0 = arith.constant 0 : i32
    %c0_i32_1 = arith.constant 0 : i32
    return %arg0, %c0_i32, %c0_i32_0 : i32, i32, i32
  }
  func.func @transform_1(%arg0: i32) -> (i32, i32, i32) {
    %c0_i32 = arith.constant 0 : i32
    %c0_i32_0 = arith.constant 0 : i32
    %c0_i32_1 = arith.constant 0 : i32
    %c0_i32_2 = arith.constant 0 : i32
    return %c0_i32, %c0_i32_0, %c0_i32_1 : i32, i32, i32
  }
  func.func @transform_2(%arg0: i32) -> (i32, i32) {
    %c0_i32 = arith.constant 0 : i32
    %c0_i32_0 = arith.constant 0 : i32
    %c0_i32_1 = arith.constant 0 : i32
    return %c0_i32, %c0_i32_0 : i32, i32
  }
  func.func @transform_3(%arg0: i32) -> (i32, i32, i32) {
    %c0_i32 = arith.constant 0 : i32
    %c0_i32_0 = arith.constant 0 : i32
    %c0_i32_1 = arith.constant 0 : i32
    return %arg0, %c0_i32, %c0_i32_0 : i32, i32, i32
  }
}

</mosaic_0001>

<bundles_post_ra>
// kernel: tpu_custom_call.1
= control target key start
LH: loop header
LB: loop body
LE: loop exit
PB: predicated region body
PF: predicated region fallthrough
CT: control target
= control target key end

     0   :  { %8 = vsyncpa [#allocation3], 0  ;;  %s1175_s0 = inlined_call_operand.vmem [shape: bf16[2,16,256], index: 0, kind: input, shape index: {}]   ;;  %s1176_s1 = inlined_call_operand.vmem [shape: bf16[4,8,16], index: 1, kind: input, shape index: {}]   ;;  %s1177_s2 = inlined_call_operand.vmem [shape: f32[128,1], index: 2, kind: input, shape index: {}]   ;;  %s1178_s3 = inlined_call_operand.hbm [shape: f32[2,8,128], index: 3, kind: output, shape index: {}]  }
   0x1   :  { %10 = vsyncpa [#allocation3 + $0x1], 0  ;;  %s995_s12 = smov 0   ;;  %s997_s13 = smov 0  }
   0x2   :  { %s999_s14 = smov 0   ;;  %s1001_s15 = smov 0  }
   0x3 LB: > { %s1016_s16 = sadd.s32 4294967295, %s965_s15   ;;  %s636_s17 = sadd.s32 4294967294, %s965_s15   ;;  %s965_s15 = sphi %s1001_s15, %s1184_s15   ;;  %s961_s14 = sphi %s999_s14, %s1183_s14   ;;  %s957_s13 = sphi %s997_s13, %s1182_s13   ;;  %s953_s12 = sphi %s995_s12, %s1181_s12  }
   0x4   : > { %s1020_s18 = sadd.s32 1, %s965_s15   ;;  %s91_s19 = sadd.s32 1, %s961_s14 }
   0x5   : > { %s88_s20 = ssub.s32 %s965_s15, %s1020_s18  ;;  %p101_p0 = scmp.ne.s32.totalorder %s961_s14, %s957_s13 }
   0x6   : > { %p89_p1 = scmp.eq.s32.totalorder %s88_s20, 0  ;;  %p102_p2 = scmp.eq.s32.totalorder %s1016_s16, 1 }
   0x7   : > { %p107_p3 = scmp.ne.s32.totalorder %s957_s13, %s953_s12  ;;  %p108_p4 = scmp.eq.s32.totalorder %s636_s17, 1 }
   0x8   : > { %s1031_s21 = scalar_select %p89_p1, %s961_s14, %s91_s19  }
   0x9   : > { %p1033_p5 = por %p102_p2, %p101_p0  ;;  %p1037_p6 = por %p108_p4, %p107_p3 }
   0xa   : > { %p639_p7 = scmp.ge.s32.totalorder %s965_s15, 1  ;;  %p140_p8 = scmp.lt.s32.totalorder %s965_s15, 3 }
   0xc   : > { %p141_p9 = pnand %p639_p7, %p140_p8 }
   0xd   : > { %p164_p10 = scmp.lt.s32.totalorder (!%p141_p9), %s1016_s16, 1  ;;  %v967_v0 = vmov (!%p141_p9), 0.0   ;;  %vm968_vm0 = vmmov (!%p141_p9), 0   ;;  %s969_s29 = smov (!%p141_p9), 119   ;;  %vm187_vm1 = vcmask (!%p141_p9), 1039360   ;;  %vm284_vm2 = vcmask (!%p141_p9), 973824  }
   0xe   : > { %144 = sbr.rel (%p141_p9) target bundleno = 753 (0x2f1), region = 32  ;;  %699 = vmatprep.subr.bf16.mxu1 (!%p141_p9), %v967_v0  ;;  %711 = vmatprep.subr.bf16.mxu0 (!%p141_p9), %v967_v0  ;;  %s970_s30 = smov (!%p141_p9), 127   ;;  %vm337_vm3 = vcmask (!%p141_p9), 965632   ;;  %v643_v9 = vld [vmem:[%s1176_s1 + $0x4] sm:$0xf] (!%p141_p9)  ;;  %vm190_vm4 = vcmask (!%p141_p9), 130048  }
   0xf   : > { %701 = vmatprep.mubr.msk.bf16.mxu1 (!%p141_p9), %vm968_vm0, %v967_v0  ;;  %713 = vmatprep.mubr.msk.bf16.mxu0 (!%p141_p9), %vm968_vm0, %v967_v0  ;;  %s971_s4 = smov (!%p141_p9), 118   ;;  %v648_v10 = vld [vmem:[%s1176_s1 + $0x8] sm:$0xf] (!%p141_p9)  ;;  %v972_v14 = vmov (!%p141_p9), 0.0|0.0   ;;  %v384_v15 = vld [vmem:[%s1177_s2] sm:$0xff] (!%p141_p9)  ;;  %v386_v20 = vld [vmem:[%s1177_s2 + $0x10] sm:$0xff] (!%p141_p9) }
  0x10   : > { %v385_v16 = vld [vmem:[%s1177_s2 + $0x8] sm:$0xff] (!%p141_p9)  ;;  %v172_v17 = vld [vmem:[%s1176_s1] sm:$0xf] (!%p141_p9)  ;;  %v387_v21 = vld [vmem:[%s1177_s2 + $0x18] sm:$0xff] (!%p141_p9)  ;;  %v973_v51 = vmov (!%p141_p9), 0   ;;  %s161_s9 = sand.u32 (!%p141_p9), 1, %s957_s13  }
  0x11   : > { %v650_v18 = vld [vmem:[%s1176_s1 + $0xc] sm:$0xf] (!%p141_p9)  ;;  %v794_v19 = vpack.c.bf16 (!%p141_p9), %v385_v16, %v384_v15  ;;  %v797_v22 = vpack.c.bf16 (!%p141_p9), %v387_v21, %v386_v20  ;;  %v388_v23 = vld [vmem:[%s1177_s2 + $0x20] sm:$0xff] (!%p141_p9)  ;;  %v390_v26 = vld [vmem:[%s1177_s2 + $0x30] sm:$0xff] (!%p141_p9)  ;;  %896 = vset.pattern.permute.xlu0 (!%p141_p9), %v973_v51  ;;  %897 = vset.pattern.permute.xlu1 (!%p141_p9), %v973_v51  ;;  %s640_s10 = sshll.u32 (!%p141_p9), %s161_s9, 3  ;;  %s653_s11 = sshll.u32 (!%p141_p9), %s1016_s16, 7 }
  0x12   : > { %v389_v24 = vld [vmem:[%s1177_s2 + $0x28] sm:$0xff] (!%p141_p9)  ;;  %v391_v27 = vld [vmem:[%s1177_s2 + $0x38] sm:$0xff] (!%p141_p9)  ;;  %v392_v29 = vld [vmem:[%s1177_s2 + $0x40] sm:$0xff] (!%p141_p9)  ;;  %s163_s17 = scalar_lea.vmem (!%p141_p9), [#allocation2], %s640_s10  ;;  %s564_s26 = scalar_lea.sflag (!%p141_p9), [#allocation3], %s161_s9 }
  0x13   : > { %v800_v25 = vpack.c.bf16 (!%p141_p9), %v389_v24, %v388_v23  ;;  %v803_v28 = vpack.c.bf16 (!%p141_p9), %v391_v27, %v390_v26  ;;  %v393_v30 = vld [vmem:[%s1177_s2 + $0x48] sm:$0xff] (!%p141_p9)  ;;  %v394_v32 = vld [vmem:[%s1177_s2 + $0x50] sm:$0xff] (!%p141_p9)  ;;  %v395_v33 = vld [vmem:[%s1177_s2 + $0x58] sm:$0xff] (!%p141_p9)  ;;  %s577_s19 = sshll.u32 (!%p141_p9), %s163_s17, 4  ;;  %s1135_s19 = int_to_ptr.vmem [resolvable:$true] %s577_s19 }
  0x14   : > { %v806_v31 = vpack.c.bf16 (!%p141_p9), %v393_v30, %v392_v29  ;;  %v809_v34 = vpack.c.bf16 (!%p141_p9), %v395_v33, %v394_v32  ;;  %v396_v35 = vld [vmem:[%s1177_s2 + $0x60] sm:$0xff] (!%p141_p9)  ;;  %v397_v36 = vld [vmem:[%s1177_s2 + $0x68] sm:$0xff] (!%p141_p9)  ;;  %v398_v38 = vld [vmem:[%s1177_s2 + $0x70] sm:$0xff] (!%p141_p9)  ;;  %s903_s27 = scalar_lea.vmem (!%p141_p9), %s1135_s19, 128 }
  0x15   : > { %s165_s24 = scalar_select %p164_p10, %s1016_s16, 1  ;;  %v812_v37 = vpack.c.bf16 %v397_v36, %v396_v35  ;;  %v399_v39 = vld [vmem:[%s1177_s2 + $0x78] sm:$0xff] }
  0x16   : > { %v815_v40 = vpack.c.bf16 %v399_v39, %v398_v38  ;;  %p904_p11 = scmp.ne.s32.totalorder %s1135_s19, %s903_s27  ;;  %s974_s16 = smov [#allocation2]  }
  0x17   : > { %s656_s25 = sshll.u32 %s165_s24, 4 }
  0x18   : > { %s168_s28 = scalar_lea.vmem %s1175_s0, %s656_s25  ;;  %s1133_s25 = scalar_lea.hbm %s1178_s3, %s653_s11 }
  0x19   : > { %v898_v1 = vld [vmem:[%s168_s28] ss:$8 sps:$4 sm:$0xff]   ;;  %v900_v2 = vld [vmem:[%s168_s28 + $0x4] ss:$8 sps:$4 sm:$0xff]   ;;  %p905_p12 = pnand %p904_p11, %p1033_p5  ;;  %s907_s28 = sshll.u32 %s974_s16, 4  ;;  %s908_s28 = int_to_ptr.vmem [resolvable:$false] %s907_s28 }
  0x1a   : > { %280 = vrot.lane.b32.xlu1 %v898_v1, %s969_s29  ;;  %183 = vrot.lane.b32.xlu0 %v898_v1, %s970_s30  ;;  %p910_p0 = scmp.lt.s32.totalorder %s1135_s19, %s908_s28 }
  0x1b   : > { %p906_p13 = pneg %p905_p12 }
  0x1e   : > { %282 = vrot.lane.b32.xlu1 %v900_v2, %s969_s29  ;;  %185 = vrot.lane.b32.xlu0 %v900_v2, %s970_s30  ;;  %s909_s29 = scalar_lea.vmem %s908_s28, 256 }
  0x1f   : > { %p911_p1 = scmp.lt.s32.totalorder %s909_s29, %s903_s27 }
  0x21   : > { %p912_p2 = por %p911_p1, %p910_p0 }
  0x22   : > { %335 = vrot.lane.b32.xlu1 %v900_v2, %s971_s4  ;;  %333 = vrot.lane.b32.xlu0 %v898_v1, %s971_s4 }
  0x23   : > { %p913_p3 = pnand %p912_p2, %p906_p13 }
  0x8c   : > { %v281_v3 = vpop.permute.xlu1 %280  ;;  %v184_v4 = vpop.permute.xlu0 %183 }
  0x90   : > { %v283_v5 = vpop.permute.xlu1 %282  ;;  %v186_v6 = vpop.permute.xlu0 %185 }
  0x91   : > { %v188_v7 = vsel %vm187_vm1, %v184_v4, %v186_v6  ;;  %v285_v8 = vsel %vm284_vm2, %v281_v3, %v283_v5 }
  0x92   : > { %700 = vmatpush3.bf16.msra.mxu1 %v188_v7  ;;  %712 = vmatpush3.bf16.msra.mxu0 %v285_v8 }
  0x93   : > { %705 = vmatprep.subr.bf16.mxu1 %v967_v0  ;;  %717 = vmatprep.subr.bf16.mxu0 %v967_v0 }
  0x94   : > { %v336_v11 = vpop.permute.xlu1 %335  ;;  %v334_v12 = vpop.permute.xlu0 %333 }
  0x95   : > { %v338_v13 = vsel %vm337_vm3, %v334_v12, %v336_v11  ;;  %702 = vmatmul.mubr.msk.bf16.vlgmr.msra.gmra.mrb[0].mxu1 %vm190_vm4, %v643_v9  ;;  %714 = vmatmul.mubr.msk.bf16.vlgmr.msra.gmra.mrb[0].mxu0 %vm190_vm4, %v648_v10 }
  0x96   : > { %706 = vmatpush3.bf16.msra.mxu1 %v898_v1  ;;  %718 = vmatpush3.bf16.msra.mxu0 %v338_v13 }
  0x97   : > { %707 = vmatprep.mubr.msk.bf16.mxu1 %vm968_vm0, %v967_v0  ;;  %719 = vmatprep.mubr.msk.bf16.mxu0 %vm968_vm0, %v967_v0 }
  0x98   : > { %793 = vmatprep.subr.bf16.mxu1 %v972_v14  ;;  %817 = vmatprep.subr.bf16.mxu0 %v972_v14 }
  0xa1   : > { %708 = vmatmul.mubr.msk.bf16.vlgmr.msra.gmra.mrb[0].mxu1 %vm190_vm4, %v172_v17  ;;  %720 = vmatmul.mubr.msk.bf16.vlgmr.msra.gmra.mrb[0].mxu0 %vm190_vm4, %v650_v18 }
  0xa2   : > { %795 = vmatpush3.bf16.msra.mxu1 %v794_v19  ;;  %819 = vmatpush3.bf16.msra.mxu0 %v794_v19 }
  0xa3   : > { %796 = vmatprep.subr.bf16.mxu1 %v972_v14  ;;  %820 = vmatprep.subr.bf16.mxu0 %v972_v14 }
  0xa4   : > { %755 = vmatprep.mubr.msk.f32.mxu1 %vm968_vm0, %v967_v0  ;;  %790 = vmatprep.mubr.msk.f32.mxu0 %vm968_vm0, %v967_v0 }
  0xa6   : > { %798 = vmatpush3.bf16.msra.mxu1 %v797_v22  ;;  %822 = vmatpush3.bf16.msra.mxu0 %v797_v22 }
  0xa7   : > { %799 = vmatprep.subr.bf16.mxu1 %v972_v14  ;;  %823 = vmatprep.subr.bf16.mxu0 %v972_v14 }
  0xaa   : > { %801 = vmatpush3.bf16.msra.mxu1 %v800_v25  ;;  %825 = vmatpush3.bf16.msra.mxu0 %v800_v25 }
  0xab   : > { %802 = vmatprep.subr.bf16.mxu1 %v972_v14  ;;  %826 = vmatprep.subr.bf16.mxu0 %v972_v14 }
  0xae   : > { %804 = vmatpush3.bf16.msra.mxu1 %v803_v28  ;;  %828 = vmatpush3.bf16.msra.mxu0 %v803_v28 }
  0xaf   : > { %805 = vmatprep.subr.bf16.mxu1 %v972_v14  ;;  %829 = vmatprep.subr.bf16.mxu0 %v972_v14 }
  0xb2   : > { %807 = vmatpush3.bf16.msra.mxu1 %v806_v31  ;;  %831 = vmatpush3.bf16.msra.mxu0 %v806_v31 }
  0xb3   : > { %808 = vmatprep.subr.bf16.mxu1 %v972_v14  ;;  %832 = vmatprep.subr.bf16.mxu0 %v972_v14 }
  0xb6   : > { %810 = vmatpush3.bf16.msra.mxu1 %v809_v34  ;;  %834 = vmatpush3.bf16.msra.mxu0 %v809_v34 }
  0xb7   : > { %811 = vmatprep.subr.bf16.mxu1 %v972_v14  ;;  %835 = vmatprep.subr.bf16.mxu0 %v972_v14 }
  0xba   : > { %813 = vmatpush3.bf16.msra.mxu1 %v812_v37  ;;  %837 = vmatpush3.bf16.msra.mxu0 %v812_v37 }
  0xbb   : > { %814 = vmatprep.subr.bf16.mxu1 %v972_v14  ;;  %838 = vmatprep.subr.bf16.mxu0 %v972_v14 }
  0xbe   : > { %816 = vmatpush3.bf16.msra.mxu1 %v815_v40  ;;  %840 = vmatpush3.bf16.msra.mxu0 %v815_v40 }
 0x174   : > { %v272_v41 = vpop.f32.mrb[0].mxu1  ;;  %v377_v42 = vpop.f32.mrb[0].mxu0 }
 0x175   : > { %v841_v43 = vadd.f32 %v377_v42, %v272_v41  ;;  %v709_v44 = vpop.f32.mrb[1].mxu1  ;;  %v721_v45 = vpop.f32.mrb[1].mxu0 }
 0x176   : > { %v275_v46 = vpop.f32.mrb[2].mxu1  ;;  %v380_v47 = vpop.f32.mrb[2].mxu0 }
 0x177   : > { %v470_v48 = vmul.f32 %v841_v43, %v841_v43  ;;  %v710_v49 = vpop.f32.mrb[3].mxu1  ;;  %v722_v50 = vpop.f32.mrb[3].mxu0  ;;  %756 = vmatmul.mubr.f32.vlgmr.msra.gmra.mrb[4].mxu1 %v841_v43 }
 0x179   : > { %791 = vmatmul.mubr.f32.vlgmr.msra.gmra.mrb[4].mxu0 %v470_v48 }
 0x24a   : > { %v466_v52 = vpop.f32.mrb[4].mxu1 }
 0x24b   : > { %v541_v53 = vmul.f32 0.015625, %v466_v52  ;;  %v757_v54 = vpop.f32.mrb[5].mxu1 }
 0x24c   : > { %v537_v55 = vpop.f32.mrb[4].mxu0 }
 0x24d   : > { %v543_v56 = vmul.f32 %v541_v53, %v541_v53  ;;  %v542_v57 = vmul.f32 0.015625, %v537_v55  ;;  %547 = vperm.xlu0 %896, %v541_v53   ;;  %v792_v58 = vpop.f32.mrb[5].mxu0 }
 0x24f   : > { %v544_v59 = vsub.f32 %v542_v57, %v543_v56 }
 0x251   : > { %v551_v60 = vadd.f32 1e-05, %v544_v59 }
 0x253   : > { %901 = vrsqrt.f32 %v551_v60 }
 0x25d   : > { %v902_v61 = vpop.eup %901 }
 0x25e   : > { %555 = vperm.xlu1 %897, %v902_v61  }
 0x2cc   : > { %v548_v62 = vpop.permute.xlu0 %547 }
 0x2cd   : > { %v550_v63 = vsub.f32 %v841_v43, %v548_v62 }
 0x2dd   : > { %v556_v0 = vpop.permute.xlu1 %555 }
 0x2de   : > { %v558_v1 = vmul.f32 %v556_v0, %v550_v63 }
 0x2e0   : > { %vm559_vm5 = vcmp.ge.f32.partialorder %v558_v1, 0.0  ;;  %v560_v2 = vmul.f32 0.2, %v558_v1 }
 0x2e2   : > { %v561_v3 = vsel %vm559_vm5, %v558_v1, %v560_v2 }
 0x2e3   : > { %562 = vst [vmem:[%s163_s17] sm:$0xff] %v561_v3 }
 0x2e4   : > { %916 = shalt.err (!%p913_p3)
}
 0x2e5   : > { %s917_s30 = scalar_lea.hbm %s1133_s25, 128  ;;  %s921_s6 = scalar_lea.hbm %s1178_s3, 256 }
 0x2e6   : > { %p918_p4 = scmp.ne.s32.totalorder %s1133_s25, %s917_s30  ;;  %p922_p9 = scmp.lt.u32.totalorder %s1133_s25, %s1178_s3 }
 0x2e7   : > { %p923_p10 = scmp.lt.u32.totalorder %s921_s6, %s917_s30  ;;  %p925_p12 = scmp.lt.u32.totalorder %s917_s30, %s1133_s25 }
 0x2e8   : > { %p919_p7 = pnand %p918_p4, %p1033_p5 }
 0x2e9   : > { %p924_p11 = por %p923_p10, %p922_p9 }
 0x2ea   : > { %p920_p8 = pneg %p919_p7 }
 0x2eb   : > { %p926_p13 = por %p925_p12, %p924_p11 }
 0x2ed   : > { %p927_p0 = pnand %p926_p13, %p920_p8 }
 0x2ef   : > { %930 = shalt.err (!%p927_p0)
}
 0x2f0   : > { %850 = dma.vmem_to_hbm [thread:$0]  (%p1033_p5), %s1135_s19, 128, %s1133_s25, %s564_s26  }
 0x2f1 PF: > { %p856_p1 = scmp.ge.s32.totalorder %s965_s15, 2  ;;  %s589_s9 = sand.u32 1, %s953_s12  }
 0x2f2   : > { %s590_s10 = scalar_lea.sflag [#allocation3], %s589_s9 }
 0x2f3   : > { %p853_p2 = pnand %p856_p1, %p1037_p6 }
 0x2f5   : > { %948 = dma.done.wait (!%p853_p2), %s590_s10, 128  }
 0x2f6   : > { %950 = vsyncadd (!%p853_p2), %s590_s10, 4294967168  ;;  %p13_p3 = scmp.ge.s32.totalorder %s1020_s18, 4   ;;  %s1181_s12 = smov %s957_s13 }
 0x2f7   : > { %s1182_s13 = smov %s961_s14  ;;  %s1183_s14 = smov %s1031_s21 }
 0x2f8   : > { %s1184_s15 = smov %s1020_s18  ;;  %15 = sbr.rel (!%p13_p3) target bundleno = 3 (0x3), region = 70 }
 0x2ff   :  { %595 = vsyncpa [#allocation3], 1 }
 0x300   :  { %597 = vsyncpa [#allocation3 + $0x1], 1 }

</bundles_post_ra>
